<compile_context>
chip_gen: v7x
topology: tpu7x:2x2x1
jax: 0.10.0
libtpu: 0.0.40
codegen_flags: <defaults>
</compile_context>

<pallas_src>
import functools

import jax
import jax.numpy as jnp
from jax.experimental import pallas as pl
from jax.experimental.pallas import tpu as pltpu


_TARGET_IN_BYTES = 2 << 20   # ~2 MiB of input per grid step (safe v5e..v7x)
_LANES = 128


def _bcosify_kernel_dense(scale_ref, bias_ref, x_ref, o_ref):
    # scale/bias: (1, C, 1, 128) f32, VMEM-resident across the whole grid.
    # x_ref: (n_chunk, C, s_chunk, 128); o_ref: (n_chunk, 2C, s_chunk, 128).
    c = x_ref.shape[1]
    normed = (x_ref[...] * scale_ref[...] + bias_ref[...]).astype(o_ref.dtype)
    o_ref[:, 0:c, :, :] = normed
    o_ref[:, c:2 * c, :, :] = -normed


def _bcosify_kernel_flat(scale_ref, bias_ref, x_ref, o_ref):
    # Fallback path (H*W % 128 != 0).  scale/bias: (1, C, 1) f32.
    # x_ref: (n_chunk, C, hw_chunk); o_ref: (n_chunk, 2C, hw_chunk).
    c = x_ref.shape[1]
    normed = (x_ref[...] * scale_ref[...] + bias_ref[...]).astype(o_ref.dtype)
    o_ref[:, 0:c, :] = normed
    o_ref[:, c:2 * c, :] = -normed


def _round_up(x, m):
    return ((x + m - 1) // m) * m


def _dense_tiles(N, C, S, itemsize):
    """Pick (n_chunk, s_chunk) for the (N, C, S, 128) layout."""
    row_bytes = C * _LANES * itemsize            # bytes per sublane-row of one image
    max_rows = max(1, _TARGET_IN_BYTES // row_bytes)
    if S <= max_rows:
        s_chunk = S                              # full spatial extent in one block
        per_batch = S * row_bytes
        n_chunk = max(1, min(N, _TARGET_IN_BYTES // max(per_batch, 1)))
    else:
        s_chunk = min(S, max(8, (max_rows // 8) * 8))   # multiple of 8 sublanes
        n_chunk = 1
    # Guarantee >= 2 grid steps when the shape allows: on v7x a single-step
    # grid leaves one of the two TensorCores (half the HBM bandwidth) idle.
    if pl.cdiv(N, n_chunk) * pl.cdiv(S, s_chunk) < 2:
        if N >= 2:
            n_chunk = (N + 1) // 2
        elif S >= 16:
            s_chunk = _round_up((S + 1) // 2, 8)
    return n_chunk, s_chunk


def _flat_tiles(N, C, HW, itemsize):
    """Pick (n_chunk, hw_chunk) for the fallback (N, C, HW) layout."""
    per_batch = C * HW * itemsize
    if per_batch <= _TARGET_IN_BYTES:
        hw_chunk = HW
        n_chunk = max(1, min(N, _TARGET_IN_BYTES // max(per_batch, 1)))
    else:
        # Cap the block: largest 128-multiple under the byte target.  The last
        # grid step is boundary-clamped, so hw_chunk need not divide HW.
        max_lanes = max(_LANES, _TARGET_IN_BYTES // (C * itemsize))
        hw_chunk = min(HW, (max_lanes // _LANES) * _LANES)
        n_chunk = 1
    if pl.cdiv(N, n_chunk) * pl.cdiv(HW, hw_chunk) < 2:
        if N >= 2:
            n_chunk = (N + 1) // 2
        elif HW >= 2 * _LANES:
            hw_chunk = _round_up((HW + 1) // 2, _LANES)
    return n_chunk, hw_chunk


@functools.partial(jax.jit, static_argnames=("inplace",))
def bcosify_normalize(x, mean, std, inplace=False):
    """x: (N, C, H, W); mean/std: (C,). Returns (N, 2C, H, W) in x.dtype."""
    del inplace  # functionally out-of-place; irrelevant for JAX semantics
    N, C, H, W = x.shape
    HW = H * W
    itemsize = jnp.dtype(x.dtype).itemsize

    # Per-channel affine params (sign flip done in-kernel so x is read once).
    # Note: x*(1/std) + (-mean/std) differs from (x-mean)/std only in rounding.
    std_f = std.astype(jnp.float32)
    mean_f = mean.astype(jnp.float32)
    scale_c = (1.0 / std_f).reshape(1, C, 1, 1)
    bias_c = (-mean_f / std_f).reshape(1, C, 1, 1)

    compiler_params = pltpu.CompilerParams(
        dimension_semantics=("parallel", "parallel"))

    # TODO(synk): callers that tolerate bf16 output could pass a bf16 out_shape
    # dtype below for a ~33% HBM-traffic win; kept x.dtype for parity with the
    # PyTorch module.

    if HW % _LANES == 0:
        # --- Dense, lane/sublane-aligned main path ---
        S = HW // _LANES
        n_chunk, s_chunk = _dense_tiles(N, C, S, itemsize)
        grid = (pl.cdiv(N, n_chunk), pl.cdiv(S, s_chunk))

        # Lane-aligned resident operands: no per-step lane broadcast in-kernel.
        scale = jnp.broadcast_to(scale_c, (1, C, 1, _LANES))
        bias = jnp.broadcast_to(bias_c, (1, C, 1, _LANES))
        x_r = x.reshape(N, C, S, _LANES)          # contiguous => free

        grid_spec = pltpu.PrefetchScalarGridSpec(
            num_scalar_prefetch=0,
            grid=grid,
            in_specs=[
                pl.BlockSpec((1, C, 1, _LANES), lambda n, s: (0, 0, 0, 0)),
                pl.BlockSpec((1, C, 1, _LANES), lambda n, s: (0, 0, 0, 0)),
                pl.BlockSpec((n_chunk, C, s_chunk, _LANES),
                             lambda n, s: (n, 0, s, 0)),
            ],
            out_specs=pl.BlockSpec((n_chunk, 2 * C, s_chunk, _LANES),
                                   lambda n, s: (n, 0, s, 0)),
        )
        out = pl.pallas_call(
            _bcosify_kernel_dense,
            out_shape=jax.ShapeDtypeStruct((N, 2 * C, S, _LANES), x.dtype),
            grid_spec=grid_spec,
            compiler_params=compiler_params,
        )(scale, bias, x_r)
        # (N, 2C, S, 128) -> (N, 2C, H, W): contiguous == channel-concat layout.
        return out.reshape(N, 2 * C, H, W)

    # --- Fallback: ragged spatial extent (H*W not a multiple of 128) ---
    n_chunk, hw_chunk = _flat_tiles(N, C, HW, itemsize)
    grid = (pl.cdiv(N, n_chunk), pl.cdiv(HW, hw_chunk))
    scale = scale_c.reshape(1, C, 1)
    bias = bias_c.reshape(1, C, 1)
    x_r = x.reshape(N, C, HW)

    grid_spec = pltpu.PrefetchScalarGridSpec(
        num_scalar_prefetch=0,
        grid=grid,
        in_specs=[
            pl.BlockSpec((1, C, 1), lambda n, h: (0, 0, 0)),
            pl.BlockSpec((1, C, 1), lambda n, h: (0, 0, 0)),
            pl.BlockSpec((n_chunk, C, hw_chunk), lambda n, h: (n, 0, h)),
        ],
        out_specs=pl.BlockSpec((n_chunk, 2 * C, hw_chunk),
                               lambda n, h: (n, 0, h)),
    )
    out = pl.pallas_call(
        _bcosify_kernel_flat,
        out_shape=jax.ShapeDtypeStruct((N, 2 * C, HW), x.dtype),
        grid_spec=grid_spec,
        compiler_params=compiler_params,
    )(scale, bias, x_r)
    return out.reshape(N, 2 * C, H, W)


def _reference(x, mean, std):
    normed = (x - mean[None, :, None, None]) / std[None, :, None, None]
    return jnp.concatenate([normed, -normed], axis=-3)


if __name__ == "__main__":
    key = jax.random.PRNGKey(0)
    mean = jnp.array([0.485, 0.456, 0.406], dtype=jnp.float32)
    std = jnp.array([0.229, 0.224, 0.225], dtype=jnp.float32)

    # Main (dense, lane-aligned) path: H*W = 256 is a multiple of 128.
    N, C, H, W = 2, 3, 16, 16
    x = jax.random.uniform(key, (N, C, H, W), dtype=jnp.float32)
    out = jax.block_until_ready(bcosify_normalize(x, mean, std))
    ref = _reference(x, mean, std)
    assert out.shape == (N, 2 * C, H, W), out.shape
    assert jnp.allclose(out, ref, atol=1e-5, rtol=1e-5), "dense path mismatch"

    # Fallback (ragged) path: H*W = 64 is not a multiple of 128.
    x2 = jax.random.uniform(jax.random.PRNGKey(1), (2, 3, 8, 8), dtype=jnp.float32)
    out2 = jax.block_until_ready(bcosify_normalize(x2, mean, std))
    ref2 = _reference(x2, mean, std)
    assert out2.shape == (2, 6, 8, 8), out2.shape
    assert jnp.allclose(out2, ref2, atol=1e-5, rtol=1e-5), "flat path mismatch"

    print("KERNEL_OK")
</pallas_src>

<mosaic_0001>
module attributes {stable_mosaic.version = 11 : i64} {
  func.func @_bcosify_kernel_dense(%arg0: i32, %arg1: i32, %arg2: memref<1x3x1x128xf32, #tpu.memory_space<vmem>>, %arg3: memref<1x3x1x128xf32, #tpu.memory_space<vmem>>, %arg4: memref<1x3x2x128xf32, #tpu.memory_space<vmem>>, %arg5: memref<1x6x2x128xf32, #tpu.memory_space<vmem>>) attributes {dimension_semantics = [#tpu.dimension_semantics<parallel>, #tpu.dimension_semantics<parallel>], iteration_bounds = array<i64: 2, 1>, scalar_prefetch = 0 : i64, scratch_operands = 0 : i64, tpu.core_type = #tpu.core_type<tc>, window_params = [{pipeline_mode = #tpu.pipeline_mode<synchronous>, transform_indices = @transform_0, window_bounds = array<i64: 1, 3, 1, 128>}, {pipeline_mode = #tpu.pipeline_mode<synchronous>, transform_indices = @transform_1, window_bounds = array<i64: 1, 3, 1, 128>}, {transform_indices = @transform_2, window_bounds = array<i64: 1, 3, 2, 128>}, {transform_indices = @transform_3, window_bounds = array<i64: 1, 6, 2, 128>}]} {
    %c0 = arith.constant 0 : index
    %c0_0 = arith.constant 0 : index
    %c0_1 = arith.constant 0 : index
    %c0_2 = arith.constant 0 : index
    %0 = vector.load %arg4[%c0, %c0_0, %c0_1, %c0_2] : memref<1x3x2x128xf32, #tpu.memory_space<vmem>>, vector<1x3x2x128xf32>
    %c0_3 = arith.constant 0 : index
    %c0_4 = arith.constant 0 : index
    %c0_5 = arith.constant 0 : index
    %c0_6 = arith.constant 0 : index
    %1 = vector.load %arg2[%c0_3, %c0_4, %c0_5, %c0_6] : memref<1x3x1x128xf32, #tpu.memory_space<vmem>>, vector<1x3x1x128xf32>
    %2 = vector.broadcast %1 : vector<1x3x1x128xf32> to vector<1x3x2x128xf32>
    %3 = arith.mulf %0, %2 : vector<1x3x2x128xf32>
    %c0_7 = arith.constant 0 : index
    %c0_8 = arith.constant 0 : index
    %c0_9 = arith.constant 0 : index
    %c0_10 = arith.constant 0 : index
    %4 = vector.load %arg3[%c0_7, %c0_8, %c0_9, %c0_10] : memref<1x3x1x128xf32, #tpu.memory_space<vmem>>, vector<1x3x1x128xf32>
    %5 = vector.broadcast %4 : vector<1x3x1x128xf32> to vector<1x3x2x128xf32>
    %6 = arith.addf %3, %5 : vector<1x3x2x128xf32>
    %c0_11 = arith.constant 0 : index
    %c0_12 = arith.constant 0 : index
    %c0_13 = arith.constant 0 : index
    %c0_14 = arith.constant 0 : index
    %7 = vector.load %arg5[%c0_11, %c0_12, %c0_13, %c0_14] : memref<1x6x2x128xf32, #tpu.memory_space<vmem>>, vector<1x3x2x128xf32>
    tpu.vector_store %arg5[%c0_11, %c0_12, %c0_13, %c0_14], %6 {strides = array<i32>} : memref<1x6x2x128xf32, #tpu.memory_space<vmem>>, vector<1x3x2x128xf32>,
    %cst = arith.constant 0.000000e+00 : f32
    %8 = vector.broadcast %cst : f32 to vector<1x3x2x128xf32>
    %9 = arith.subf %8, %6 : vector<1x3x2x128xf32>
    %c0_15 = arith.constant 0 : index
    %c3 = arith.constant 3 : index
    %c0_16 = arith.constant 0 : index
    %c0_17 = arith.constant 0 : index
    %10 = vector.load %arg5[%c0_15, %c3, %c0_16, %c0_17] : memref<1x6x2x128xf32, #tpu.memory_space<vmem>>, vector<1x3x2x128xf32>
    tpu.vector_store %arg5[%c0_15, %c3, %c0_16, %c0_17], %9 {strides = array<i32>} : memref<1x6x2x128xf32, #tpu.memory_space<vmem>>, vector<1x3x2x128xf32>,
    return
  }
  func.func @transform_0(%arg0: i32, %arg1: i32) -> (i32, i32, i32, i32) {
    %c0_i32 = arith.constant 0 : i32
    %c0_i32_0 = arith.constant 0 : i32
    %c0_i32_1 = arith.constant 0 : i32
    %c0_i32_2 = arith.constant 0 : i32
    %c0_i32_3 = arith.constant 0 : i32
    return %c0_i32, %c0_i32_0, %c0_i32_1, %c0_i32_2 : i32, i32, i32, i32
  }
  func.func @transform_1(%arg0: i32, %arg1: i32) -> (i32, i32, i32, i32) {
    %c0_i32 = arith.constant 0 : i32
    %c0_i32_0 = arith.constant 0 : i32
    %c0_i32_1 = arith.constant 0 : i32
    %c0_i32_2 = arith.constant 0 : i32
    %c0_i32_3 = arith.constant 0 : i32
    return %c0_i32, %c0_i32_0, %c0_i32_1, %c0_i32_2 : i32, i32, i32, i32
  }
  func.func @transform_2(%arg0: i32, %arg1: i32) -> (i32, i32, i32, i32) {
    %c0_i32 = arith.constant 0 : i32
    %c0_i32_0 = arith.constant 0 : i32
    %c0_i32_1 = arith.constant 0 : i32
    return %arg0, %c0_i32, %arg1, %c0_i32_0 : i32, i32, i32, i32
  }
  func.func @transform_3(%arg0: i32, %arg1: i32) -> (i32, i32, i32, i32) {
    %c0_i32 = arith.constant 0 : i32
    %c0_i32_0 = arith.constant 0 : i32
    %c0_i32_1 = arith.constant 0 : i32
    return %arg0, %c0_i32, %arg1, %c0_i32_0 : i32, i32, i32, i32
  }
}

</mosaic_0001>

<bundles_post_ra>
// kernel: bcosify_normalize.1
= control target key start
LH: loop header
LB: loop body
LE: loop exit
PB: predicated region body
PF: predicated region fallthrough
CT: control target
= control target key end

     0   :  { %s434_s12 = smov 0   ;;  %s436_s13 = smov 0   ;;  %s485_s0 = inlined_call_operand.vmem [shape: f32[1,3,1,128], index: 0, kind: input, shape index: {}]   ;;  %s486_s1 = inlined_call_operand.vmem [shape: f32[1,3,1,128], index: 1, kind: input, shape index: {}]   ;;  %s487_s2 = inlined_call_operand.vmem [shape: f32[2,3,2,128], index: 2, kind: input, shape index: {}]   ;;  %s488_s3 = inlined_call_operand.vmem [shape: f32[2,6,2,128], index: 3, kind: output, shape index: {}]  }
   0x1   :  { %s438_s14 = smov 0  }
   0x2 LB: > { %s25_s15 = sadd.s32 1, %s408_s13  ;;  %p350_p0 = scmp.ge.s32.totalorder %s412_s14, 1  ;;  %s412_s14 = sphi %s438_s14, %s13_s14   ;;  %s408_s13 = sphi %s436_s13, %s490_s13   ;;  %s404_s12 = sphi %s434_s12, %s489_s12  }
   0x3   : > { %p27_p1 = scmp.ge.s32.totalorder %s25_s15, 2  ;;  %p156_p2 = scmp.lt.s32.totalorder %s412_s14, 3 }
   0x5   : > { %s492_s15 = smov (%p27_p1, %s25_s15), 0  ;;  %p157_p3 = pnand %p350_p0, %p156_p2 }
   0x6   : > { %p186_p4 = scmp.lt.s32.totalorder (!%p157_p3), %s404_s12, 1  ;;  %v353_v0 = vld [vmem:[%s485_s0] ss:$0 sm:$0xff] (!%p157_p3)  ;;  %v354_v1 = vld [vmem:[%s485_s0 + $0x1] ss:$0 sm:$0xff] (!%p157_p3) }
   0x7   : > { %160 = sbr.rel (%p157_p3) target bundleno = 27 (0x1b), region = 32  ;;  %v355_v2 = vld [vmem:[%s485_s0 + $0x2] ss:$0 sm:$0xff] (!%p157_p3)  ;;  %v356_v3 = vld [vmem:[%s486_s1] ss:$0 sm:$0xff] (!%p157_p3) }
   0x8   : > { %v357_v4 = vld [vmem:[%s486_s1 + $0x1] ss:$0 sm:$0xff] (!%p157_p3)  ;;  %v358_v5 = vld [vmem:[%s486_s1 + $0x2] ss:$0 sm:$0xff] (!%p157_p3) }
   0xe   : > { %s494_s12 = smov (!%p186_p4, %s404_s12), 1 }
   0xf   : > { %s364_s16 = smul.u32 6, %s494_s12 }
  0x10   : > { %s365_s19 = smul.u32 12, %s494_s12 }
  0x11   : > { %s193_s26 = scalar_lea.vmem %s487_s2, %s364_s16 }
  0x12   : > { %v202_v6 = vld [vmem:[%s193_s26] sm:$0x3]  ;;  %v203_v7 = vld [vmem:[%s193_s26 + $0x2] sm:$0x3]  ;;  %v204_v8 = vld [vmem:[%s193_s26 + $0x4] sm:$0x3]  ;;  %s201_s8 = scalar_lea.vmem %s488_s3, %s365_s19 }
  0x13   : > { %v226_v9 = vmul.f32 %v353_v0, %v202_v6  ;;  %v227_v10 = vmul.f32 %v354_v1, %v203_v7  ;;  %v228_v11 = vmul.f32 %v355_v2, %v204_v8 }
  0x15   : > { %v250_v12 = vadd.f32 %v356_v3, %v226_v9  ;;  %v251_v13 = vadd.f32 %v357_v4, %v227_v10  ;;  %v252_v14 = vadd.f32 %v358_v5, %v228_v11 }
  0x17   : > { %253 = vst [vmem:[%s201_s8] sm:$0x3] %v250_v12  ;;  %254 = vst [vmem:[%s201_s8 + $0x2] sm:$0x3] %v251_v13  ;;  %v256_v15 = vsub.f32 0.0, %v250_v12  ;;  %v257_v16 = vsub.f32 0.0, %v251_v13  ;;  %v258_v17 = vsub.f32 0.0, %v252_v14 }
  0x18   : > { %255 = vst [vmem:[%s201_s8 + $0x4] sm:$0x3] %v252_v14 }
  0x19   : > { %359 = vst [vmem:[%s201_s8 + $0x6] sm:$0x3] %v256_v15  ;;  %360 = vst [vmem:[%s201_s8 + $0x8] sm:$0x3] %v257_v16 }
  0x1a   : > { %361 = vst [vmem:[%s201_s8 + $0xa] sm:$0x3] %v258_v17 }
  0x1b PF: > { %s13_s14 = sadd.s32 1, %s412_s14   ;;  %s489_s12 = smov %s408_s13 }
  0x1c   : > { %p10_p5 = scmp.ge.s32.totalorder %s13_s14, 4   ;;  %s490_s13 = smov %s492_s15 }
  0x1e   :  { %12 = sbr.rel (!%p10_p5) target bundleno = 2 (0x2), region = 63 }

</bundles_post_ra>
